<compile_context>
chip_gen: v5e
topology: v5e:2x2
jax: 0.10.0
libtpu: 0.0.40
codegen_flags: <defaults>
</compile_context>

<pallas_src>
import functools
import math

import jax
import jax.numpy as jnp
from jax.experimental import pallas as pl
from jax.experimental.pallas import tpu as pltpu


_LANES = 128
_TARGET_OUT_BLOCK_BYTES = 2 * 1024 * 1024   # ~2 MiB output block
_MAX_ROW_BLOCK_BYTES = 512 * 1024           # cap on one output-block row width
_SUBLANE = {4: 8, 2: 16, 1: 32}             # min sublane multiple per itemsize


def _round_up(x: int, m: int) -> int:
    return ((x + m - 1) // m) * m


def _stack_std_kernel(p_ref, c_ref, o_ref, *, inv_radius, dim, pack, n_centers):
    """Per-center-slice broadcast-subtract; no output-sized temporary.

    p_ref: (tile_n, pack*dim)        packed sample tile
    c_ref: (n_centers, dim)          centers block (resident, tiny)
    o_ref: (tile_n, pack*n_centers*dim)  lane-dense output block
    """
    for j in range(pack):
        pj = p_ref[:, j * dim:(j + 1) * dim]                  # (tile_n, dim)
        for m in range(n_centers):
            col = (j * n_centers + m) * dim
            o_ref[:, col:col + dim] = (pj - c_ref[m:m + 1, :]) * inv_radius


def stack_std(p: jax.Array, centers: jax.Array, radius: float) -> jax.Array:
    """(p[:, None, :] - centers[None, ...]) / radius  -> (N, M, D)."""
    N, D = p.shape
    M, Dc = centers.shape
    assert D == Dc, "feature dims of p and centers must match"

    dtype = p.dtype
    if centers.dtype != dtype:
        centers = centers.astype(dtype)
    itemsize = jnp.dtype(dtype).itemsize
    sublane = _SUBLANE.get(itemsize, 8)

    row_w = M * D                      # one sample's output row, in elements

    # --- Lane-density packing for small M*D (free row-major reshapes). ------
    pack = 1
    if row_w % _LANES != 0:
        k = _LANES // math.gcd(row_w, _LANES)
        if k > 1 and N % k == 0 and k * row_w * itemsize <= _MAX_ROW_BLOCK_BYTES:
            pack = k

    if pack > 1:
        n_rows = N // pack
        p_in = p.reshape(n_rows, pack * D)     # free reshape (contiguous)
        c_rows = M
        m_blocks = 1
        width_blk = pack * row_w               # multiple of 128 by construction
    else:
        n_rows = N
        p_in = p
        # --- Optional center-axis (lane) split for very wide rows. ----------
        c_rows = M
        if row_w * itemsize > _MAX_ROW_BLOCK_BYTES and M > 8:
            q = _LANES // math.gcd(D, _LANES)      # smallest mb: mb*D % 128 == 0
            g = q * 8 // math.gcd(q, 8)            # ... and mb % 8 == 0
            if g < M:
                mb = (_MAX_ROW_BLOCK_BYTES // (D * itemsize)) // g * g
                mb = max(g, mb)
                if mb < M:
                    c_rows = mb
        m_blocks = pl.cdiv(M, c_rows)
        width_blk = c_rows * D
        # TODO(synk): if D alone is so large that (sublane x D) overflows VMEM,
        # a further lane split inside D would be needed.

    p_width = pack * D
    total_w = pack * row_w                     # full width of the 2-D out slab

    # --- tile_n from a ~2 MiB output-block target (dtype-aware rounding). ---
    budget_rows = _TARGET_OUT_BLOCK_BYTES // (width_blk * itemsize)
    budget_rows = max(sublane, min(2048, (budget_rows // sublane) * sublane))
    if n_rows <= budget_rows:
        if m_blocks == 1 and n_rows >= 2 * sublane:
            # >=2 grid blocks so v7x's two TensorCores both get work.
            tile_n = _round_up(pl.cdiv(n_rows, 2), sublane)
        else:
            tile_n = n_rows                    # block == full dim, no masking
    else:
        tile_n = budget_rows

    n_blocks = pl.cdiv(n_rows, tile_n)

    # --- VMEM footprint (double-buffered out + p blocks, plus centers). -----
    footprint = 2 * (tile_n * width_blk + tile_n * p_width + c_rows * D) * itemsize
    vmem_limit = int(min(48 << 20, max(24 << 20, 2 * footprint)))

    kernel = functools.partial(
        _stack_std_kernel,
        inv_radius=1.0 / float(radius),
        dim=D, pack=pack, n_centers=c_rows)

    out2d = pl.pallas_call(
        kernel,
        out_shape=jax.ShapeDtypeStruct((n_rows, total_w), dtype),
        grid_spec=pltpu.PrefetchScalarGridSpec(
            num_scalar_prefetch=0,
            grid=(n_blocks, m_blocks),
            in_specs=[
                pl.BlockSpec((tile_n, p_width), lambda i, j: (i, 0)),  # p tile
                pl.BlockSpec((c_rows, D), lambda i, j: (j, 0)),        # centers
            ],
            out_specs=pl.BlockSpec((tile_n, width_blk), lambda i, j: (i, j)),
        ),
        compiler_params=pltpu.CompilerParams(
            dimension_semantics=("parallel", "parallel"),
            vmem_limit_bytes=vmem_limit,
        ),
        cost_estimate=pl.CostEstimate(
            flops=2 * N * M * D,
            transcendentals=0,
            bytes_accessed=(N * D + M * D + N * M * D) * itemsize,
        ),
    )(p_in, centers)

    return out2d.reshape(N, M, D)              # free row-major reshape


if __name__ == "__main__":
    key = jax.random.PRNGKey(0)
    k_p, k_c = jax.random.split(key)

    N, M, D = 16, 4, 16
    radius = 0.5

    p = jax.random.normal(k_p, (N, D), dtype=jnp.float32)
    centers = jax.random.normal(k_c, (M, D), dtype=jnp.float32)

    out = jax.block_until_ready(stack_std(p, centers, radius))
    ref = (p[:, None, :] - centers[None, :, :]) / radius
    assert out.shape == (N, M, D)
    assert jnp.allclose(out, ref, atol=1e-6, rtol=1e-6)

    # Ragged N (not a multiple of the pack factor / sublane): unpacked path,
    # block shapes equal the full dims so no padding or masking is needed.
    N2 = 13
    p2 = jax.random.normal(k_p, (N2, D), dtype=jnp.float32)
    out2 = jax.block_until_ready(stack_std(p2, centers, radius))
    ref2 = (p2[:, None, :] - centers[None, :, :]) / radius
    assert out2.shape == (N2, M, D)
    assert jnp.allclose(out2, ref2, atol=1e-6, rtol=1e-6)

    print("KERNEL_OK")
</pallas_src>

<mosaic_0001>
module attributes {stable_mosaic.version = 11 : i64} {
  func.func @_stack_std_kernel(%arg0: i32, %arg1: i32, %arg2: memref<8x32xf32, #tpu.memory_space<vmem>>, %arg3: memref<4x16xf32, #tpu.memory_space<vmem>>, %arg4: memref<8x128xf32, #tpu.memory_space<vmem>>) attributes {dimension_semantics = [#tpu.dimension_semantics<parallel>, #tpu.dimension_semantics<parallel>], iteration_bounds = array<i64: 1, 1>, scalar_prefetch = 0 : i64, scratch_operands = 0 : i64, tpu.core_type = #tpu.core_type<tc>, window_params = [{transform_indices = @transform_0, window_bounds = array<i64: 8, 32>}, {transform_indices = @transform_1, window_bounds = array<i64: 4, 16>}, {transform_indices = @transform_2, window_bounds = array<i64: 8, 128>}]} {
    %c0 = arith.constant 0 : index
    %c0_0 = arith.constant 0 : index
    %0 = vector.load %arg2[%c0, %c0_0] : memref<8x32xf32, #tpu.memory_space<vmem>>, vector<8x16xf32>
    %c0_1 = arith.constant 0 : index
    %c0_2 = arith.constant 0 : index
    %1 = vector.load %arg3[%c0_1, %c0_2] : memref<4x16xf32, #tpu.memory_space<vmem>>, vector<1x16xf32>
    %2 = vector.broadcast %1 : vector<1x16xf32> to vector<8x16xf32>
    %3 = arith.subf %0, %2 : vector<8x16xf32>
    %cst = arith.constant 2.000000e+00 : f32
    %4 = vector.broadcast %cst : f32 to vector<8x16xf32>
    %5 = arith.mulf %3, %4 : vector<8x16xf32>
    %c0_3 = arith.constant 0 : index
    %c0_4 = arith.constant 0 : index
    %6 = vector.load %arg4[%c0_3, %c0_4] : memref<8x128xf32, #tpu.memory_space<vmem>>, vector<8x16xf32>
    tpu.vector_store %arg4[%c0_3, %c0_4], %5 {strides = array<i32>} : memref<8x128xf32, #tpu.memory_space<vmem>>, vector<8x16xf32>,
    %c1 = arith.constant 1 : index
    %c0_5 = arith.constant 0 : index
    %7 = vector.load %arg3[%c1, %c0_5] : memref<4x16xf32, #tpu.memory_space<vmem>>, vector<1x16xf32>
    %8 = vector.broadcast %7 : vector<1x16xf32> to vector<8x16xf32>
    %9 = arith.subf %0, %8 : vector<8x16xf32>
    %cst_6 = arith.constant 2.000000e+00 : f32
    %10 = vector.broadcast %cst_6 : f32 to vector<8x16xf32>
    %11 = arith.mulf %9, %10 : vector<8x16xf32>
    %c0_7 = arith.constant 0 : index
    %c16 = arith.constant 16 : index
    %12 = vector.load %arg4[%c0_7, %c16] : memref<8x128xf32, #tpu.memory_space<vmem>>, vector<8x16xf32>
    tpu.vector_store %arg4[%c0_7, %c16], %11 {strides = array<i32>} : memref<8x128xf32, #tpu.memory_space<vmem>>, vector<8x16xf32>,
    %c2 = arith.constant 2 : index
    %c0_8 = arith.constant 0 : index
    %13 = vector.load %arg3[%c2, %c0_8] : memref<4x16xf32, #tpu.memory_space<vmem>>, vector<1x16xf32>
    %14 = vector.broadcast %13 : vector<1x16xf32> to vector<8x16xf32>
    %15 = arith.subf %0, %14 : vector<8x16xf32>
    %cst_9 = arith.constant 2.000000e+00 : f32
    %16 = vector.broadcast %cst_9 : f32 to vector<8x16xf32>
    %17 = arith.mulf %15, %16 : vector<8x16xf32>
    %c0_10 = arith.constant 0 : index
    %c32 = arith.constant 32 : index
    %18 = vector.load %arg4[%c0_10, %c32] : memref<8x128xf32, #tpu.memory_space<vmem>>, vector<8x16xf32>
    tpu.vector_store %arg4[%c0_10, %c32], %17 {strides = array<i32>} : memref<8x128xf32, #tpu.memory_space<vmem>>, vector<8x16xf32>,
    %c3 = arith.constant 3 : index
    %c0_11 = arith.constant 0 : index
    %19 = vector.load %arg3[%c3, %c0_11] : memref<4x16xf32, #tpu.memory_space<vmem>>, vector<1x16xf32>
    %20 = vector.broadcast %19 : vector<1x16xf32> to vector<8x16xf32>
    %21 = arith.subf %0, %20 : vector<8x16xf32>
    %cst_12 = arith.constant 2.000000e+00 : f32
    %22 = vector.broadcast %cst_12 : f32 to vector<8x16xf32>
    %23 = arith.mulf %21, %22 : vector<8x16xf32>
    %c0_13 = arith.constant 0 : index
    %c48 = arith.constant 48 : index
    %24 = vector.load %arg4[%c0_13, %c48] : memref<8x128xf32, #tpu.memory_space<vmem>>, vector<8x16xf32>
    tpu.vector_store %arg4[%c0_13, %c48], %23 {strides = array<i32>} : memref<8x128xf32, #tpu.memory_space<vmem>>, vector<8x16xf32>,
    %c0_14 = arith.constant 0 : index
    %c16_15 = arith.constant 16 : index
    %25 = vector.load %arg2[%c0_14, %c16_15] : memref<8x32xf32, #tpu.memory_space<vmem>>, vector<8x16xf32>
    %c0_16 = arith.constant 0 : index
    %c0_17 = arith.constant 0 : index
    %26 = vector.load %arg3[%c0_16, %c0_17] : memref<4x16xf32, #tpu.memory_space<vmem>>, vector<1x16xf32>
    %27 = vector.broadcast %26 : vector<1x16xf32> to vector<8x16xf32>
    %28 = arith.subf %25, %27 : vector<8x16xf32>
    %cst_18 = arith.constant 2.000000e+00 : f32
    %29 = vector.broadcast %cst_18 : f32 to vector<8x16xf32>
    %30 = arith.mulf %28, %29 : vector<8x16xf32>
    %c0_19 = arith.constant 0 : index
    %c64 = arith.constant 64 : index
    %31 = vector.load %arg4[%c0_19, %c64] : memref<8x128xf32, #tpu.memory_space<vmem>>, vector<8x16xf32>
    tpu.vector_store %arg4[%c0_19, %c64], %30 {strides = array<i32>} : memref<8x128xf32, #tpu.memory_space<vmem>>, vector<8x16xf32>,
    %c1_20 = arith.constant 1 : index
    %c0_21 = arith.constant 0 : index
    %32 = vector.load %arg3[%c1_20, %c0_21] : memref<4x16xf32, #tpu.memory_space<vmem>>, vector<1x16xf32>
    %33 = vector.broadcast %32 : vector<1x16xf32> to vector<8x16xf32>
    %34 = arith.subf %25, %33 : vector<8x16xf32>
    %cst_22 = arith.constant 2.000000e+00 : f32
    %35 = vector.broadcast %cst_22 : f32 to vector<8x16xf32>
    %36 = arith.mulf %34, %35 : vector<8x16xf32>
    %c0_23 = arith.constant 0 : index
    %c80 = arith.constant 80 : index
    %37 = vector.load %arg4[%c0_23, %c80] : memref<8x128xf32, #tpu.memory_space<vmem>>, vector<8x16xf32>
    tpu.vector_store %arg4[%c0_23, %c80], %36 {strides = array<i32>} : memref<8x128xf32, #tpu.memory_space<vmem>>, vector<8x16xf32>,
    %c2_24 = arith.constant 2 : index
    %c0_25 = arith.constant 0 : index
    %38 = vector.load %arg3[%c2_24, %c0_25] : memref<4x16xf32, #tpu.memory_space<vmem>>, vector<1x16xf32>
    %39 = vector.broadcast %38 : vector<1x16xf32> to vector<8x16xf32>
    %40 = arith.subf %25, %39 : vector<8x16xf32>
    %cst_26 = arith.constant 2.000000e+00 : f32
    %41 = vector.broadcast %cst_26 : f32 to vector<8x16xf32>
    %42 = arith.mulf %40, %41 : vector<8x16xf32>
    %c0_27 = arith.constant 0 : index
    %c96 = arith.constant 96 : index
    %43 = vector.load %arg4[%c0_27, %c96] : memref<8x128xf32, #tpu.memory_space<vmem>>, vector<8x16xf32>
    tpu.vector_store %arg4[%c0_27, %c96], %42 {strides = array<i32>} : memref<8x128xf32, #tpu.memory_space<vmem>>, vector<8x16xf32>,
    %c3_28 = arith.constant 3 : index
    %c0_29 = arith.constant 0 : index
    %44 = vector.load %arg3[%c3_28, %c0_29] : memref<4x16xf32, #tpu.memory_space<vmem>>, vector<1x16xf32>
    %45 = vector.broadcast %44 : vector<1x16xf32> to vector<8x16xf32>
    %46 = arith.subf %25, %45 : vector<8x16xf32>
    %cst_30 = arith.constant 2.000000e+00 : f32
    %47 = vector.broadcast %cst_30 : f32 to vector<8x16xf32>
    %48 = arith.mulf %46, %47 : vector<8x16xf32>
    %c0_31 = arith.constant 0 : index
    %c112 = arith.constant 112 : index
    %49 = vector.load %arg4[%c0_31, %c112] : memref<8x128xf32, #tpu.memory_space<vmem>>, vector<8x16xf32>
    tpu.vector_store %arg4[%c0_31, %c112], %48 {strides = array<i32>} : memref<8x128xf32, #tpu.memory_space<vmem>>, vector<8x16xf32>,
    return
  }
  func.func @transform_0(%arg0: i32, %arg1: i32) -> (i32, i32) {
    %c0_i32 = arith.constant 0 : i32
    %c0_i32_0 = arith.constant 0 : i32
    return %arg0, %c0_i32 : i32, i32
  }
  func.func @transform_1(%arg0: i32, %arg1: i32) -> (i32, i32) {
    %c0_i32 = arith.constant 0 : i32
    %c0_i32_0 = arith.constant 0 : i32
    return %arg1, %c0_i32 : i32, i32
  }
  func.func @transform_2(%arg0: i32, %arg1: i32) -> (i32, i32) {
    %c0_i32 = arith.constant 0 : i32
    return %arg0, %arg1 : i32, i32
  }
}

</mosaic_0001>

<bundles_post_ra>
// kernel: tpu_custom_call.1
= control target key start
LH: loop header
LB: loop body
LE: loop exit
PB: predicated region body
PF: predicated region fallthrough
CT: control target
= control target key end

     0   :  { %7 = vsyncpa [#allocation3], 0  ;;  %s280_s0 = inlined_call_operand.hbm [shape: f32[8,32], index: 0, kind: input, shape index: {}]   ;;  %s281_s1 = inlined_call_operand.hbm [shape: f32[4,16], index: 1, kind: input, shape index: {}]   ;;  %s282_s2 = inlined_call_operand.hbm [shape: f32[8,128], index: 2, kind: output, shape index: {}]  }
   0x1   :  { %8 = vsyncpa [#allocation6], 0 }
   0x2   :  { %9 = vsyncpa [#allocation4], 0  ;;  %s15_s11 = sshll.u32 %s280_s0, 4  ;;  %s247_s12 = smov [#allocation2]   ;;  %s16_s11 = int_to_ptr.hbm [resolvable:$true] %s15_s11 }
   0x3   :  { %s17_s13 = sshll.u32 %s247_s12, 4  ;;  %s26_s16 = sshll.u32 %s281_s1, 4  ;;  %s18_s13 = int_to_ptr.vmem [resolvable:$true] %s17_s13  ;;  %s27_s16 = int_to_ptr.hbm [resolvable:$true] %s26_s16 }
   0x4   :  { %20 = dma.hbm_to_vmem [thread:$0]  %s16_s11, 128, %s18_s13, [#allocation3]  }
   0x5   :  { %s248_s17 = smov [#allocation5]  }
   0x6   :  { %s28_s18 = sshll.u32 %s248_s17, 4  ;;  %s29_s18 = int_to_ptr.vmem [resolvable:$true] %s28_s18 }
   0x7   :  { %31 = dma.hbm_to_vmem [thread:$0]  %s27_s16, 64, %s29_s18, [#allocation6]  }
   0x8   :  { %241 = dma.done.wait [#allocation3], 128  }
   0x9   :  { %242 = vsyncadd [#allocation3], 4294967168 }
   0xa   :  { %243 = dma.done.wait [#allocation6], 64  }
   0xb   :  { %244 = vsyncadd [#allocation6], 4294967232  ;;  %v161_v0 = vld [vmem:[#allocation5 + $0x2] ss:$0 sm:$0xff]  ;;  %v162_v1 = vld [vmem:[#allocation5] ss:$0 sm:$0xff] }
   0xc   :  { %s249_s0 = smov 16   ;;  %v163_v2 = vld [vmem:[#allocation5 + $0x3] ss:$0 sm:$0xff]  ;;  %v164_v3 = vld [vmem:[#allocation5 + $0x1] ss:$0 sm:$0xff]  ;;  %v40_v5 = vld [vmem:[#allocation2] sm:$0xff] }
   0xd   :  { %109 = vrot.lane.b32.xlu1 %v161_v0, %s249_s0  ;;  %81 = vrot.lane.b32.xlu0 %v162_v1, %s249_s0  ;;  %v165_v4 = vld [vmem:[#allocation5 + $0x3] ss:$0 sm:$0xff]  ;;  %s250_s1 = smov 48   ;;  %v166_v8 = vld [vmem:[#allocation5 + $0x1] ss:$0 sm:$0xff]  ;;  %s251_s19 = smov 32  }
   0xe   :  { %v69_v6 = vsub.f32 %v40_v5, %v165_v4  ;;  %v49_v9 = vsub.f32 %v40_v5, %v166_v8  ;;  %v167_v11 = vld [vmem:[#allocation5 + $0x2] ss:$0 sm:$0xff]  ;;  %s252_s20 = smov 80   ;;  %s253_s21 = smov 96   ;;  %v168_v26 = vld [vmem:[#allocation5] ss:$0 sm:$0xff] }
   0xf   :  { %v59_v12 = vsub.f32 %v40_v5, %v167_v11  ;;  %s254_s22 = smov 64   ;;  %v43_v27 = vsub.f32 %v40_v5, %v168_v26  ;;  %vm45_vm0 = vcmask 130048   ;;  %vm55_vm1 = vcmask 261248   ;;  %s255_s23 = smov [#allocation7]  }
  0x10   :  { %v70_v7 = vmul.f32 2.0, %v69_v6  ;;  %v50_v10 = vmul.f32 2.0, %v49_v9  ;;  %vm65_vm2 = vcmask 392448   ;;  %vm75_vm3 = vcmask 523648   ;;  %s139_s24 = sshll.u32 %s255_s23, 4  ;;  %s141_s27 = sshll.u32 %s282_s2, 4  ;;  %s140_s24 = int_to_ptr.vmem [resolvable:$true] %s139_s24  ;;  %s142_s27 = int_to_ptr.hbm [resolvable:$true] %s141_s27 }
  0x11   :  { %v60_v13 = vmul.f32 2.0, %v59_v12  ;;  %v44_v28 = vmul.f32 2.0, %v43_v27  ;;  %vm90_vm4 = vcmask 654848   ;;  %vm104_vm5 = vcmask 786048  }
  0x12   :  { %52 = vrot.lane.b32.xlu2 %v50_v10, %s249_s0  ;;  %vm118_vm6 = vcmask 917248   ;;  %vm132_vm7 = vcmask 1048448  }
  0x13   :  { %46 = vst.msk [vmem:[#allocation7] sm:$0xff] %vm45_vm0, %v44_v28 }
  0x15   :  { %123 = vrot.lane.b32.xlu1 %v163_v2, %s249_s0  ;;  %95 = vrot.lane.b32.xlu0 %v164_v3, %s249_s0 }
  0x1a   :  { %62 = vrot.lane.b32.xlu2 %v60_v13, %s251_s19 }
  0x1d   :  { %72 = vrot.lane.b32.xlu0 %v70_v7, %s250_s1 }
  0x6c   :  { %v53_v29 = vpop.permute.xlu2 %52 }
  0x6d   :  { %56 = vst.msk [vmem:[#allocation7] sm:$0xff] %vm55_vm1, %v53_v29 }
  0x74   :  { %v63_v30 = vpop.permute.xlu2 %62 }
  0x75   :  { %66 = vst.msk [vmem:[#allocation7] sm:$0xff] %vm65_vm2, %v63_v30 }
  0x7f   :  { %v110_v14 = vpop.permute.xlu1 %109  ;;  %v82_v16 = vpop.permute.xlu0 %81 }
  0x80   :  { %v112_v15 = vsub.f32 %v40_v5, %v110_v14  ;;  %v84_v17 = vsub.f32 %v40_v5, %v82_v16 }
  0x82   :  { %v113_v18 = vmul.f32 2.0, %v112_v15  ;;  %v85_v19 = vmul.f32 2.0, %v84_v17 }
  0x84   :  { %115 = vrot.lane.b32.xlu0 %v113_v18, %s252_s20  ;;  %87 = vrot.lane.b32.xlu1 %v85_v19, %s250_s1 }
  0x87   :  { %v124_v20 = vpop.permute.xlu1 %123  ;;  %v96_v22 = vpop.permute.xlu0 %95 }
  0x88   :  { %v126_v21 = vsub.f32 %v40_v5, %v124_v20  ;;  %v98_v23 = vsub.f32 %v40_v5, %v96_v22 }
  0x8a   :  { %v127_v24 = vmul.f32 2.0, %v126_v21  ;;  %v99_v25 = vmul.f32 2.0, %v98_v23 }
  0x8c   :  { %129 = vrot.lane.b32.xlu1 %v127_v24, %s253_s21  ;;  %101 = vrot.lane.b32.xlu2 %v99_v25, %s254_s22 }
  0x8f   :  { %v73_v31 = vpop.permute.xlu0 %72 }
  0x90   :  { %76 = vst.msk [vmem:[#allocation7] sm:$0xff] %vm75_vm3, %v73_v31 }
  0xe6   :  { %v102_v32 = vpop.permute.xlu2 %101 }
  0xf6   :  { %v88_v33 = vpop.permute.xlu1 %87  ;;  %v116_v34 = vpop.permute.xlu0 %115 }
  0xf7   :  { %91 = vst.msk [vmem:[#allocation7] sm:$0xff] %vm90_vm4, %v88_v33 }
  0xf8   :  { %105 = vst.msk [vmem:[#allocation7] sm:$0xff] %vm104_vm5, %v102_v32 }
  0xf9   :  { %119 = vst.msk [vmem:[#allocation7] sm:$0xff] %vm118_vm6, %v116_v34 }
  0xfe   :  { %v130_v35 = vpop.permute.xlu1 %129 }
  0xff   :  { %133 = vst.msk [vmem:[#allocation7] sm:$0xff] %vm132_vm7, %v130_v35 }
 0x100   :  { %144 = dma.vmem_to_hbm [thread:$0]  %s140_s24, 128, %s142_s27, [#allocation4]  }
 0x101   :  { %245 = dma.done.wait [#allocation4], 128  }
 0x102   :  { %246 = vsyncadd [#allocation4], 4294967168 }
 0x103   :  { %149 = vsyncpa [#allocation3], 1 }
 0x104   :  { %150 = vsyncpa [#allocation6], 1 }
 0x105   :  { %151 = vsyncpa [#allocation4], 1 }

</bundles_post_ra>
